<compile_context>
chip_gen: v7x
topology: tpu7x:2x2x1
jax: 0.10.0
libtpu: 0.0.40
codegen_flags: <defaults>
</compile_context>

<pallas_src>
import math
import numpy as np

import jax
import jax.numpy as jnp
from jax.experimental import pallas as pl
from jax.experimental.pallas import tpu as pltpu


# ----------------------------------------------------------------------------
# Deterministic parameter construction (host-side numpy)
# ----------------------------------------------------------------------------
NF_DCT, KD, PAD_DCT = 16, 4, 2
NF_SRM, KS, PAD_SRM = 30, 5, 2


def make_dct_weight():
    """Mirrors DCT_Layer.init_DCT: (4,4,1,16) -> transpose(3,2,0,1) -> (16,4,4)."""
    PI = math.pi
    k4 = np.zeros((4, 4, 1, 16), dtype=np.float32)
    u = np.ones(4, dtype=np.float32) * math.sqrt(2.0 / 4.0)
    u[0] = math.sqrt(1.0 / 4.0)
    for i in range(4):
        for j in range(4):
            for k in range(4):
                for l in range(4):
                    k4[i, j, :, k * 4 + l] = (u[k] * u[l]
                                              * math.cos(PI / 8.0 * k * (2 * i + 1))
                                              * math.cos(PI / 8.0 * l * (2 * j + 1)))
    return k4.transpose(3, 2, 0, 1)[:, 0]                      # (16, 4, 4)


def make_srm_weight():
    # TODO(synk): real SRM_Kernels.npy (30 fixed 5x5 high-pass filters) is not
    # available in-script; synthesize deterministic zero-mean 5x5 filters instead.
    rng = np.random.RandomState(0)
    w = rng.randn(NF_SRM, KS, KS).astype(np.float32)
    w -= w.mean(axis=(1, 2), keepdims=True)                    # zero-mean => high-pass-like
    return w                                                    # (30, 5, 5)


def _round_up(v, m):
    return (v + m - 1) // m * m


def _make_fused_conv_weight(w, WP, WO):
    """Single (k*WP, F*WO) matrix turning the whole kxk per-channel conv into ONE matmul.

    wbig[i*WP + xc, f*WO + x] = w[f, i, xc-x]  (0 <= xc-x < k), so that
      conv[(y), f*WO + x] = (lhs[y, :] @ wbig)[f*WO + x]
    with lhs[y, i*WP + xc] = xpad[y+i, xc].
    """
    F, k, _ = w.shape
    wb = np.zeros((k, WP, F * WO), dtype=np.float32)
    fidx = np.arange(F) * WO
    for i in range(k):
        for j in range(k):
            for x in range(WO):
                wb[i, x + j, fidx + x] = w[:, i, j]
    return wb.reshape(k * WP, F * WO)


def _make_row_select(C, TN, HO, HO_pad, WO):
    """(C, TN, TN*C*HO_pad) GAP row-selection matrices: 1/(HO*WO) on valid rows."""
    inv_hw = 1.0 / float(HO * WO)
    rsel = np.zeros((C, TN, TN * C * HO_pad), dtype=np.float32)
    for c in range(C):
        for n in range(TN):
            base = (n * C + c) * HO_pad
            rsel[c, n, base:base + HO] = inv_hw
    return rsel


# ----------------------------------------------------------------------------
# Fused kernel: per-channel conv (1 MXU matmul / step) + clamp + GAP + fc
# ----------------------------------------------------------------------------
def _make_conv_gap_fc_kernel(C, TN, K, post_fn):
    def kernel(lhs_ref, wbig_ref, rsel_ref, wout_ref, fcb_ref, o_ref):
        # lhs_ref : (TN*C*HO_pad, k*WP)  bf16  shifted-row views, rows ordered (n, c, y)
        # wbig_ref: (k*WP, F*WO)         bf16  fused banded conv weight
        # rsel_ref: (C, TN, TN*C*HO_pad) f32   per-channel GAP row selection (x 1/HW)
        # wout_ref: (C, F*WO, K)         f32   fc weight with per-filter lane sum folded in
        # fcb_ref : (1, K)               f32
        # o_ref   : (1, TN, K)           f32
        # Whole (TN batch, C channels) conv block in ONE lane-dense MXU matmul.
        act = post_fn(jnp.dot(lhs_ref[...], wbig_ref[...],
                              preferred_element_type=jnp.float32))   # (TN*C*HO_pad, F*WO)
        logits = jnp.zeros((TN, K), jnp.float32)
        for c in range(C):                        # C==3: tiny static unroll, no vreg pressure
            s_c = jnp.dot(rsel_ref[c], act,
                          preferred_element_type=jnp.float32)        # (TN, F*WO)  == GAP rows
            logits = logits + jnp.dot(s_c, wout_ref[c],
                                      preferred_element_type=jnp.float32)   # (TN, K)
        o_ref[0] = logits + fcb_ref[...]
    return kernel


def preprocess_gap_fc(x, conv_w, pad, post_fn, fc_w, fc_b):
    """x: (N,C,H,W) f32; conv_w: (F,k,k); fc_w: (C*F,K); fc_b: (1,K) -> (N,K)."""
    N, C, H, W = x.shape
    F, k, _ = conv_w.shape
    K = fc_w.shape[1]
    HP, WP = H + 2 * pad, W + 2 * pad
    HO, WO = HP - k + 1, WP - k + 1
    HO_pad = _round_up(HO, 8)                 # keep block row counts 8-aligned (sublanes)
    KWP, FWO = k * WP, F * WO

    # Batch-block size: fill the MXU M dimension (~128-256 rows) per grid step.
    # TODO(synk): per-generation tuning (v5e/v6e single-TC can take ~2x larger blocks
    # than v7x; on v7x keep >=2 grid steps so both TensorCores get work).
    TN = max(1, min(N, max(1, 256 // (C * HO_pad))))
    NB = (N + TN - 1) // TN
    Npad = NB * TN
    Mblk = TN * C * HO_pad

    # ---- wrapper-side layout plumbing (XLA) --------------------------------
    xb = jnp.pad(x, ((0, Npad - N), (0, 0), (0, 0), (0, 0)))
    xp = jnp.pad(xb, ((0, 0), (0, 0), (pad, pad), (pad, pad)))          # (Npad,C,HP,WP)
    # Shifted-row concatenation: lhs[(n,c,y), i*WP + xc] = xp[n,c,y+i,xc].
    # TODO(synk): at production image sizes, width-tile wbig (shift-invariant
    # (k, WOt+k-1, F*WOt) tile, WOt=128) and build the halo in-kernel instead of
    # this k-fold wrapper-side materialization (keeps wbig O(1) in W and under
    # v7x's 64 MiB VMEM).
    lhs = jnp.concatenate([xp[:, :, i:i + HO, :] for i in range(k)], axis=-1)
    lhs = jnp.pad(lhs, ((0, 0), (0, 0), (0, HO_pad - HO), (0, 0)))      # pad rows -> post_fn(0)=0
    lhs = lhs.reshape(Npad * C * HO_pad, KWP).astype(jnp.bfloat16)

    wbig = jnp.asarray(_make_fused_conv_weight(np.asarray(conv_w, np.float32), WP, WO),
                       dtype=jnp.bfloat16)                              # (KWP, FWO)
    rsel = jnp.asarray(_make_row_select(C, TN, HO, HO_pad, WO))         # (C, TN, Mblk)
    # GAP lane-group sum folded into fc weight: wout[c, f*WO + x, :] = fc_w[c*F + f, :]
    wout = jnp.repeat(fc_w.reshape(C, F, K), WO, axis=1)                # (C, FWO, K)

    kernel = _make_conv_gap_fc_kernel(C, TN, K, post_fn)
    out = pl.pallas_call(
        kernel,
        out_shape=jax.ShapeDtypeStruct((NB, TN, K), jnp.float32),
        grid=(NB,),
        in_specs=[
            pl.BlockSpec((Mblk, KWP), lambda n: (n, 0)),
            pl.BlockSpec((KWP, FWO), lambda n: (0, 0)),
            pl.BlockSpec((C, TN, Mblk), lambda n: (0, 0, 0)),
            pl.BlockSpec((C, FWO, K), lambda n: (0, 0, 0)),
            pl.BlockSpec((1, K), lambda n: (0, 0)),
        ],
        out_specs=pl.BlockSpec((1, TN, K), lambda n: (n, 0, 0)),
        compiler_params=pltpu.CompilerParams(dimension_semantics=("parallel",)),
    )(lhs, wbig, rsel, wout, fc_b)
    return out.reshape(Npad, K)[:N]


# ----------------------------------------------------------------------------
# No-preprocessing path: GAP folded into fc weight -> ONE matmul, one grid step
# ----------------------------------------------------------------------------
def _gap_fc_kernel(xf_ref, w_ref, b_ref, o_ref):
    # xf_ref: (N, C*H*W) lane-dense; w_ref: (C*H*W, K); b_ref: (1, K); o_ref: (N, K)
    o_ref[...] = (jnp.dot(xf_ref[...], w_ref[...],
                          preferred_element_type=jnp.float32) + b_ref[...])


def gap_fc(x, fc_w, fc_b):
    """x: (N, C, H, W); fc_w: (C, K); fc_b: (1, K) -> (N, K)."""
    N, C, H, W = x.shape
    K = fc_w.shape[1]
    xf = x.reshape(N, C * H * W)                                        # lane-dense reduction
    wexp = jnp.repeat(fc_w, H * W, axis=0) * (1.0 / float(H * W))       # (C*H*W, K)
    return pl.pallas_call(                                              # single invocation
        _gap_fc_kernel,
        out_shape=jax.ShapeDtypeStruct((N, K), jnp.float32),
    )(xf, wexp, fc_b)


# ----------------------------------------------------------------------------
# TransferModel
# ----------------------------------------------------------------------------
class TransferModelPallas:
    def __init__(self, num_out_classes=2, dropout=0.0, is_DCT=False, is_SRM=False,
                 key=jax.random.PRNGKey(0)):
        if is_DCT and is_SRM:
            # TODO(synk): the original module sets input_channel=90 in this case yet
            # chains DCT->SRM (1440 channels), breaking its own backbone/fc; unsupported.
            raise ValueError("is_DCT and is_SRM simultaneously is not supported")
        self.is_DCT = is_DCT
        self.is_SRM = is_SRM
        self.input_channel = 3
        self.conv_w, self.pad, self.post_fn = None, None, None
        if is_DCT:
            self.conv_w = make_dct_weight()                      # (16, 4, 4)
            self.pad = PAD_DCT
            # DCT_Trunc(|x|) == min(|x|, 8)
            self.post_fn = lambda a: jnp.minimum(jnp.abs(a), 8.0)
            self.input_channel = 3 * NF_DCT                      # 48
        if is_SRM:
            self.conv_w = make_srm_weight()                      # (30, 5, 5)
            self.pad = PAD_SRM
            # TLU: clamp(out, -3, 3)
            self.post_fn = lambda a: jnp.clip(a, -3.0, 3.0)
            self.input_channel = 3 * NF_SRM                      # 90
        # TODO(synk): pretrained backbone replaced by GAP stand-in; num_ftrs equals
        # the preprocessed channel count rather than the backbone's feature width.
        self.num_ftrs = self.input_channel
        # TODO(synk): dropout>0 head variants not modeled (nn.Dropout is identity at eval).
        # Retrained head: init.normal_(weight, std=0.001); init.constant_(bias, 0.0).
        self.fc_w = jax.random.normal(
            key, (self.num_ftrs, num_out_classes), dtype=jnp.float32) * 0.001
        self.fc_b = jnp.zeros((1, num_out_classes), jnp.float32)

    def __call__(self, x):
        if self.is_DCT or self.is_SRM:
            return preprocess_gap_fc(x, self.conv_w, self.pad, self.post_fn,
                                     self.fc_w, self.fc_b)
        return gap_fc(x, self.fc_w, self.fc_b)


# ----------------------------------------------------------------------------
# Pure-numpy reference (float64) for a correctness self-check
# ----------------------------------------------------------------------------
def _ref_forward_np(x, conv_w, pad, post_np, fc_w, fc_b):
    x = np.asarray(x, np.float64)
    if conv_w is not None:
        conv_w = np.asarray(conv_w, np.float64)
        N, C, H, W = x.shape
        F, k, _ = conv_w.shape
        HO, WO = H + 2 * pad - k + 1, W + 2 * pad - k + 1
        xp = np.pad(x, ((0, 0), (0, 0), (pad, pad), (pad, pad)))
        out = np.zeros((N, C, F, HO, WO))
        for f in range(F):
            acc = np.zeros((N, C, HO, WO))
            for i in range(k):
                for j in range(k):
                    acc += xp[:, :, i:i + HO, j:j + WO] * conv_w[f, i, j]
            out[:, :, f] = acc
        feats = post_np(out).mean(axis=(3, 4)).reshape(N, C * F)
    else:
        feats = x.mean(axis=(2, 3))
    return feats @ np.asarray(fc_w, np.float64) + np.asarray(fc_b, np.float64)


# ----------------------------------------------------------------------------
if __name__ == "__main__":
    key = jax.random.PRNGKey(0)
    x = jax.random.normal(key, (2, 3, 16, 16), dtype=jnp.float32)   # NCHW

    # bf16 MXU inputs (f32 accumulate) -> slightly looser atol than a pure-f32 path.
    RTOL, ATOL = 2e-2, 5e-4

    # DCT preprocessing variant (input_channel -> 48)
    model_dct = TransferModelPallas(num_out_classes=2, is_DCT=True,
                                    key=jax.random.PRNGKey(0))
    out_dct = jax.block_until_ready(model_dct(x))
    assert out_dct.shape == (2, 2) and out_dct.dtype == jnp.float32
    ref_dct = _ref_forward_np(np.asarray(x), model_dct.conv_w, PAD_DCT,
                              lambda a: np.minimum(np.abs(a), 8.0),
                              np.asarray(model_dct.fc_w), np.asarray(model_dct.fc_b))
    assert np.allclose(np.asarray(out_dct), ref_dct, rtol=RTOL, atol=ATOL)

    # SRM preprocessing variant (input_channel -> 90)
    model_srm = TransferModelPallas(num_out_classes=2, is_SRM=True,
                                    key=jax.random.PRNGKey(1))
    out_srm = jax.block_until_ready(model_srm(x))
    assert out_srm.shape == (2, 2) and out_srm.dtype == jnp.float32
    ref_srm = _ref_forward_np(np.asarray(x), model_srm.conv_w, PAD_SRM,
                              lambda a: np.clip(a, -3.0, 3.0),
                              np.asarray(model_srm.fc_w), np.asarray(model_srm.fc_b))
    assert np.allclose(np.asarray(out_srm), ref_srm, rtol=RTOL, atol=ATOL)

    # No-preprocessing variant (input_channel -> 3)
    model_plain = TransferModelPallas(num_out_classes=2, key=jax.random.PRNGKey(2))
    out_plain = jax.block_until_ready(model_plain(x))
    assert out_plain.shape == (2, 2) and out_plain.dtype == jnp.float32
    ref_plain = _ref_forward_np(np.asarray(x), None, 0, None,
                                np.asarray(model_plain.fc_w), np.asarray(model_plain.fc_b))
    assert np.allclose(np.asarray(out_plain), ref_plain, rtol=RTOL, atol=ATOL)

    print("KERNEL_OK")
</pallas_src>

<mosaic_0001>
module attributes {stable_mosaic.version = 11 : i64} {
  func.func @kernel(%arg0: i32, %arg1: memref<144x80xbf16, #tpu.memory_space<vmem>>, %arg2: memref<80x272xbf16, #tpu.memory_space<vmem>>, %arg3: memref<3x2x144xf32, #tpu.memory_space<vmem>>, %arg4: memref<3x272x2xf32, #tpu.memory_space<vmem>>, %arg5: memref<1x2xf32, #tpu.memory_space<vmem>>, %arg6: memref<1x2x2xf32, #tpu.memory_space<vmem>>) attributes {dimension_semantics = [#tpu.dimension_semantics<parallel>], iteration_bounds = array<i64: 1>, scalar_prefetch = 0 : i64, scratch_operands = 0 : i64, tpu.core_type = #tpu.core_type<tc>, window_params = [{transform_indices = @transform_0, window_bounds = array<i64: 144, 80>}, {pipeline_mode = #tpu.pipeline_mode<synchronous>, transform_indices = @transform_1, window_bounds = array<i64: 80, 272>}, {pipeline_mode = #tpu.pipeline_mode<synchronous>, transform_indices = @transform_2, window_bounds = array<i64: 3, 2, 144>}, {pipeline_mode = #tpu.pipeline_mode<synchronous>, transform_indices = @transform_3, window_bounds = array<i64: 3, 272, 2>}, {pipeline_mode = #tpu.pipeline_mode<synchronous>, transform_indices = @transform_4, window_bounds = array<i64: 1, 2>}, {transform_indices = @transform_5, window_bounds = array<i64: 1, 2, 2>}]} {
    %c0 = arith.constant 0 : index
    %c0_0 = arith.constant 0 : index
    %0 = vector.load %arg1[%c0, %c0_0] : memref<144x80xbf16, #tpu.memory_space<vmem>>, vector<144x80xbf16>
    %c0_1 = arith.constant 0 : index
    %c0_2 = arith.constant 0 : index
    %1 = vector.load %arg2[%c0_1, %c0_2] : memref<80x272xbf16, #tpu.memory_space<vmem>>, vector<80x272xbf16>
    %cst = arith.constant dense<0.000000e+00> : vector<144x272xf32>
    %2 = tpu.matmul %0, %1, %cst {dimension_numbers = #tpu.dot_dimension_numbers<[1], [0], [0], [1], [0, 0, 1, 1], [], []>} : vector<144x80xbf16>, vector<80x272xbf16>, vector<144x272xf32> -> vector<144x272xf32>
    %3 = math.absf %2 : vector<144x272xf32>
    %cst_3 = arith.constant 8.000000e+00 : f32
    %4 = vector.broadcast %cst_3 : f32 to vector<144x272xf32>
    %5 = arith.minimumf %3, %4 : vector<144x272xf32>
    %cst_4 = arith.constant 0.000000e+00 : f32
    %6 = vector.broadcast %cst_4 : f32 to vector<2x2xf32>
    %c0_5 = arith.constant 0 : index
    %c0_6 = arith.constant 0 : index
    %c0_7 = arith.constant 0 : index
    %7 = vector.load %arg3[%c0_5, %c0_6, %c0_7] : memref<3x2x144xf32, #tpu.memory_space<vmem>>, vector<1x2x144xf32>
    %8 = vector.shape_cast %7 : vector<1x2x144xf32> to vector<2x144xf32>
    %cst_8 = arith.constant dense<0.000000e+00> : vector<2x272xf32>
    %9 = tpu.matmul %8, %5, %cst_8 {dimension_numbers = #tpu.dot_dimension_numbers<[1], [0], [0], [1], [0, 0, 1, 1], [], []>} : vector<2x144xf32>, vector<144x272xf32>, vector<2x272xf32> -> vector<2x272xf32>
    %c0_9 = arith.constant 0 : index
    %c0_10 = arith.constant 0 : index
    %c0_11 = arith.constant 0 : index
    %10 = vector.load %arg4[%c0_9, %c0_10, %c0_11] : memref<3x272x2xf32, #tpu.memory_space<vmem>>, vector<1x272x2xf32>
    %11 = vector.shape_cast %10 : vector<1x272x2xf32> to vector<272x2xf32>
    %cst_12 = arith.constant dense<0.000000e+00> : vector<2x2xf32>
    %12 = tpu.matmul %9, %11, %cst_12 {dimension_numbers = #tpu.dot_dimension_numbers<[1], [0], [0], [1], [0, 0, 1, 1], [], []>} : vector<2x272xf32>, vector<272x2xf32>, vector<2x2xf32> -> vector<2x2xf32>
    %13 = arith.addf %6, %12 : vector<2x2xf32>
    %c1 = arith.constant 1 : index
    %c0_13 = arith.constant 0 : index
    %c0_14 = arith.constant 0 : index
    %14 = vector.load %arg3[%c1, %c0_13, %c0_14] : memref<3x2x144xf32, #tpu.memory_space<vmem>>, vector<1x2x144xf32>
    %15 = vector.shape_cast %14 : vector<1x2x144xf32> to vector<2x144xf32>
    %cst_15 = arith.constant dense<0.000000e+00> : vector<2x272xf32>
    %16 = tpu.matmul %15, %5, %cst_15 {dimension_numbers = #tpu.dot_dimension_numbers<[1], [0], [0], [1], [0, 0, 1, 1], [], []>} : vector<2x144xf32>, vector<144x272xf32>, vector<2x272xf32> -> vector<2x272xf32>
    %c1_16 = arith.constant 1 : index
    %c0_17 = arith.constant 0 : index
    %c0_18 = arith.constant 0 : index
    %17 = vector.load %arg4[%c1_16, %c0_17, %c0_18] : memref<3x272x2xf32, #tpu.memory_space<vmem>>, vector<1x272x2xf32>
    %18 = vector.shape_cast %17 : vector<1x272x2xf32> to vector<272x2xf32>
    %cst_19 = arith.constant dense<0.000000e+00> : vector<2x2xf32>
    %19 = tpu.matmul %16, %18, %cst_19 {dimension_numbers = #tpu.dot_dimension_numbers<[1], [0], [0], [1], [0, 0, 1, 1], [], []>} : vector<2x272xf32>, vector<272x2xf32>, vector<2x2xf32> -> vector<2x2xf32>
    %20 = arith.addf %13, %19 : vector<2x2xf32>
    %c2 = arith.constant 2 : index
    %c0_20 = arith.constant 0 : index
    %c0_21 = arith.constant 0 : index
    %21 = vector.load %arg3[%c2, %c0_20, %c0_21] : memref<3x2x144xf32, #tpu.memory_space<vmem>>, vector<1x2x144xf32>
    %22 = vector.shape_cast %21 : vector<1x2x144xf32> to vector<2x144xf32>
    %cst_22 = arith.constant dense<0.000000e+00> : vector<2x272xf32>
    %23 = tpu.matmul %22, %5, %cst_22 {dimension_numbers = #tpu.dot_dimension_numbers<[1], [0], [0], [1], [0, 0, 1, 1], [], []>} : vector<2x144xf32>, vector<144x272xf32>, vector<2x272xf32> -> vector<2x272xf32>
    %c2_23 = arith.constant 2 : index
    %c0_24 = arith.constant 0 : index
    %c0_25 = arith.constant 0 : index
    %24 = vector.load %arg4[%c2_23, %c0_24, %c0_25] : memref<3x272x2xf32, #tpu.memory_space<vmem>>, vector<1x272x2xf32>
    %25 = vector.shape_cast %24 : vector<1x272x2xf32> to vector<272x2xf32>
    %cst_26 = arith.constant dense<0.000000e+00> : vector<2x2xf32>
    %26 = tpu.matmul %23, %25, %cst_26 {dimension_numbers = #tpu.dot_dimension_numbers<[1], [0], [0], [1], [0, 0, 1, 1], [], []>} : vector<2x272xf32>, vector<272x2xf32>, vector<2x2xf32> -> vector<2x2xf32>
    %27 = arith.addf %20, %26 : vector<2x2xf32>
    %c0_27 = arith.constant 0 : index
    %c0_28 = arith.constant 0 : index
    %28 = vector.load %arg5[%c0_27, %c0_28] : memref<1x2xf32, #tpu.memory_space<vmem>>, vector<1x2xf32>
    %29 = vector.broadcast %28 : vector<1x2xf32> to vector<2x2xf32>
    %30 = arith.addf %27, %29 : vector<2x2xf32>
    %c0_29 = arith.constant 0 : index
    %c0_30 = arith.constant 0 : index
    %c0_31 = arith.constant 0 : index
    %31 = vector.load %arg6[%c0_29, %c0_30, %c0_31] : memref<1x2x2xf32, #tpu.memory_space<vmem>>, vector<1x2x2xf32>
    %32 = vector.shape_cast %31 : vector<1x2x2xf32> to vector<2x2xf32>
    %33 = vector.shape_cast %30 : vector<2x2xf32> to vector<1x2x2xf32>
    tpu.vector_store %arg6[%c0_29, %c0_30, %c0_31], %33 {strides = array<i32>} : memref<1x2x2xf32, #tpu.memory_space<vmem>>, vector<1x2x2xf32>,
    return
  }
  func.func @transform_0(%arg0: i32) -> (i32, i32) {
    %c0_i32 = arith.constant 0 : i32
    %c0_i32_0 = arith.constant 0 : i32
    return %arg0, %c0_i32 : i32, i32
  }
  func.func @transform_1(%arg0: i32) -> (i32, i32) {
    %c0_i32 = arith.constant 0 : i32
    %c0_i32_0 = arith.constant 0 : i32
    %c0_i32_1 = arith.constant 0 : i32
    return %c0_i32, %c0_i32_0 : i32, i32
  }
  func.func @transform_2(%arg0: i32) -> (i32, i32, i32) {
    %c0_i32 = arith.constant 0 : i32
    %c0_i32_0 = arith.constant 0 : i32
    %c0_i32_1 = arith.constant 0 : i32
    %c0_i32_2 = arith.constant 0 : i32
    return %c0_i32, %c0_i32_0, %c0_i32_1 : i32, i32, i32
  }
  func.func @transform_3(%arg0: i32) -> (i32, i32, i32) {
    %c0_i32 = arith.constant 0 : i32
    %c0_i32_0 = arith.constant 0 : i32
    %c0_i32_1 = arith.constant 0 : i32
    %c0_i32_2 = arith.constant 0 : i32
    return %c0_i32, %c0_i32_0, %c0_i32_1 : i32, i32, i32
  }
  func.func @transform_4(%arg0: i32) -> (i32, i32) {
    %c0_i32 = arith.constant 0 : i32
    %c0_i32_0 = arith.constant 0 : i32
    %c0_i32_1 = arith.constant 0 : i32
    return %c0_i32, %c0_i32_0 : i32, i32
  }
  func.func @transform_5(%arg0: i32) -> (i32, i32, i32) {
    %c0_i32 = arith.constant 0 : i32
    %c0_i32_0 = arith.constant 0 : i32
    %c0_i32_1 = arith.constant 0 : i32
    return %arg0, %c0_i32, %c0_i32_0 : i32, i32, i32
  }
}

</mosaic_0001>

<bundles_post_ra>
// kernel: tpu_custom_call.1
= control target key start
LH: loop header
LB: loop body
LE: loop exit
PB: predicated region body
PF: predicated region fallthrough
CT: control target
= control target key end

     0   :  { %v2244_v1 = vmov 0.0   ;;  %vm2245_vm0 = vmmov 0   ;;  %v2246_v5 = vmov 0   ;;  %vm185_vm1 = vcmask 654336   ;;  %s2939_s0 = inlined_call_operand.vmem [shape: bf16[144,80], index: 0, kind: input, shape index: {}]   ;;  %s2940_s1 = inlined_call_operand.vmem [shape: bf16[80,272], index: 1, kind: input, shape index: {}]   ;;  %s2941_s2 = inlined_call_operand.vmem [shape: f32[3,2,144], index: 2, kind: input, shape index: {}]   ;;  %s2942_s3 = inlined_call_operand.vmem [shape: f32[3,272,2], index: 3, kind: input, shape index: {}]   ;;  %s2943_s4 = inlined_call_operand.vmem [shape: f32[1,2], index: 4, kind: input, shape index: {}]   ;;  %s2944_s5 = inlined_call_operand.hbm [shape: f32[1,2,2], index: 5, kind: output, shape index: {}]  }
   0x1   :  { %v2191_v0 = vld [vmem:[%s2940_s1 + $0x4] ss:$12 sps:$4 sm:$0xff]   ;;  %1825 = vmatprep.subr.bf16.mxu1 %v2244_v1  ;;  %v2193_v2 = vld [vmem:[%s2940_s1 + $0x8] ss:$12 sps:$4 sm:$0xff]   ;;  %1835 = vmatprep.mubr.msk.bf16.mxu1 %vm2245_vm0, %v2244_v1  ;;  %v2194_v3 = vld [vmem:[%s2940_s1] ss:$12 sps:$4 sm:$0xff]  }
   0x2   :  { %213 = vmatprep.subr.bf16.mxu0 %v2191_v0  ;;  %1826 = vmatpush3.bf16.msra.mxu1 %v2193_v2  ;;  %v2195_v4 = vld [vmem:[%s2940_s1 + $0x1c] ss:$12 sps:$4 sm:$0xff]   ;;  %v2197_v6 = vld [vmem:[%s2940_s1 + $0x20] ss:$12 sps:$4 sm:$0xff]   ;;  %v2198_v7 = vld [vmem:[%s2940_s1 + $0x18] ss:$12 sps:$4 sm:$0xff]  }
   0x3   :  { %245 = vmatprep.mubr.bf16.mxu0 %v2246_v5  ;;  %214 = vmatpush1.bf16.msra.mxu0 %v2194_v3  ;;  %v2199_v8 = vld [vmem:[%s2940_s1 + $0x34] ss:$12 sps:$4 sm:$0xff]   ;;  %v2201_v9 = vld [vmem:[%s2940_s1 + $0x38] ss:$12 sps:$4 sm:$0xff]   ;;  %v2202_v10 = vld [vmem:[%s2940_s1 + $0x30] ss:$12 sps:$4 sm:$0xff]  }
   0x4   :  { %1827 = vmatprep.subr.bf16.mxu1 %v2244_v1  ;;  %215 = vmatprep.subr.bf16.mxu0 %v2195_v4  ;;  %v2203_v11 = vld [vmem:[%s2940_s1 + $0x4c] ss:$12 sps:$4 sm:$0xff]   ;;  %v2205_v12 = vld [vmem:[%s2940_s1 + $0x50] ss:$12 sps:$4 sm:$0xff]   ;;  %v2206_v13 = vld [vmem:[%s2940_s1 + $0x48] ss:$12 sps:$4 sm:$0xff]  }
   0x5   :  { %v2207_v14 = vld [vmem:[%s2940_s1 + $0x64] ss:$12 sps:$4 sm:$0xff]   ;;  %v2209_v15 = vld [vmem:[%s2940_s1 + $0x68] ss:$12 sps:$4 sm:$0xff]   ;;  %v2210_v16 = vld [vmem:[%s2940_s1 + $0x60] ss:$12 sps:$4 sm:$0xff]  }
   0x6   :  { %1828 = vmatpush3.bf16.msra.mxu1 %v2197_v6  ;;  %v2211_v17 = vld [vmem:[%s2939_s0] sm:$0xff]  }
   0x7   :  { %216 = vmatpush1.bf16.msra.mxu0 %v2198_v7  ;;  %1829 = vmatprep.subr.bf16.mxu1 %v2244_v1 }
   0x8   :  { %217 = vmatprep.subr.bf16.mxu0 %v2199_v8 }
   0xa   :  { %1830 = vmatpush3.bf16.msra.mxu1 %v2201_v9 }
   0xb   :  { %218 = vmatpush1.bf16.msra.mxu0 %v2202_v10  ;;  %1831 = vmatprep.subr.bf16.mxu1 %v2244_v1 }
   0xc   :  { %219 = vmatprep.subr.bf16.mxu0 %v2203_v11 }
   0xe   :  { %1832 = vmatpush3.bf16.msra.mxu1 %v2205_v12 }
   0xf   :  { %220 = vmatpush1.bf16.msra.mxu0 %v2206_v13  ;;  %1833 = vmatprep.subr.bf16.mxu1 %v2244_v1 }
  0x10   :  { %221 = vmatprep.subr.bf16.mxu0 %v2207_v14 }
  0x12   :  { %1834 = vmatpush3.bf16.msra.mxu1 %v2209_v15 }
  0x13   :  { %222 = vmatpush1.bf16.msra.mxu0 %v2210_v16 }
  0x14   :  { %10 = vsyncpa [#allocation3], 0  ;;  %v2212_v18 = vld [vmem:[%s2939_s0 + $0x8] sm:$0xff]   ;;  %v2213_v19 = vld [vmem:[%s2939_s0 + $0x10] sm:$0xff]   ;;  %v2247_v26 = vmov 0.0|0.0   ;;  %vm560_vm2 = vcmask 130048  }
  0x15   :  { %1836 = vmatmul.mubr.msk.bf16.vlgmr.msra.gmra.mrb[0].mxu1 %vm185_vm1, %v2211_v17  ;;  %v2214_v20 = vld [vmem:[%s2939_s0 + $0x18] sm:$0xff]   ;;  %v2215_v21 = vld [vmem:[%s2939_s0 + $0x20] sm:$0xff]   ;;  %v2216_v22 = vld [vmem:[%s2939_s0 + $0x28] sm:$0xff]   ;;  %1928 = vmatprep.subr.bf16.mxu1 %v2247_v26  ;;  %s2248_s6 = smov [#allocation2]   ;;  %vm1556_vm3 = vcmask 9216  }
  0x16   :  { %1596 = vmatmul.mubr.msk.bf16.vlgmr.msra.gmra.mrb[0].mxu0 %vm185_vm1, %v2211_v17  ;;  %1839 = vmatprep.mubr.msk.bf16.mxu1 %vm2245_vm0, %v2244_v1  ;;  %v2217_v23 = vld [vmem:[%s2939_s0 + $0x30] sm:$0xff]   ;;  %v2218_v24 = vld [vmem:[%s2939_s0 + $0x38] sm:$0xff]   ;;  %v2219_v25 = vld [vmem:[%s2939_s0 + $0x40] sm:$0xff]  }
  0x17   :  { %255 = vmatprep.mubr.bf16.mxu0 %v2246_v5  ;;  %v2405_v27 = vld.sshfl [vmem:[%s2941_s2] sm:$0x33 pattern:$0x76325410] }
  0x18   :  { %v558_v28 = vcombine.high %v2405_v27, %v2405_v27 }
  0x1d   :  { %1840 = vmatmul.mubr.msk.bf16.gmra.mrb[4].mxu1 %vm185_vm1, %v2212_v18 }
  0x1e   :  { %1597 = vmatmul.mubr.msk.bf16.gmra.mrb[4].mxu0 %vm185_vm1, %v2212_v18  ;;  %1843 = vmatprep.mubr.msk.bf16.mxu1 %vm2245_vm0, %v2244_v1 }
  0x1f   :  { %265 = vmatprep.mubr.bf16.mxu0 %v2246_v5 }
  0x25   :  { %1844 = vmatmul.mubr.msk.bf16.gmra.mrb[8].mxu1 %vm185_vm1, %v2213_v19 }
  0x26   :  { %1598 = vmatmul.mubr.msk.bf16.gmra.mrb[8].mxu0 %vm185_vm1, %v2213_v19  ;;  %1847 = vmatprep.mubr.msk.bf16.mxu1 %vm2245_vm0, %v2244_v1 }
  0x27   :  { %275 = vmatprep.mubr.bf16.mxu0 %v2246_v5 }
  0x2d   :  { %1848 = vmatmul.mubr.msk.bf16.gmra.mrb[12].mxu1 %vm185_vm1, %v2214_v20 }
  0x2e   :  { %1599 = vmatmul.mubr.msk.bf16.gmra.mrb[12].mxu0 %vm185_vm1, %v2214_v20  ;;  %1851 = vmatprep.mubr.msk.bf16.mxu1 %vm2245_vm0, %v2244_v1 }
  0x2f   :  { %285 = vmatprep.mubr.bf16.mxu0 %v2246_v5 }
  0x35   :  { %1852 = vmatmul.mubr.msk.bf16.gmra.mrb[16].mxu1 %vm185_vm1, %v2215_v21 }
  0x36   :  { %1600 = vmatmul.mubr.msk.bf16.gmra.mrb[16].mxu0 %vm185_vm1, %v2215_v21  ;;  %1855 = vmatprep.mubr.msk.bf16.mxu1 %vm2245_vm0, %v2244_v1 }
  0x37   :  { %295 = vmatprep.mubr.bf16.mxu0 %v2246_v5 }
  0x3d   :  { %1856 = vmatmul.mubr.msk.bf16.gmra.mrb[20].mxu1 %vm185_vm1, %v2216_v22 }
  0x3e   :  { %1601 = vmatmul.mubr.msk.bf16.gmra.mrb[20].mxu0 %vm185_vm1, %v2216_v22  ;;  %1859 = vmatprep.mubr.msk.bf16.mxu1 %vm2245_vm0, %v2244_v1 }
  0x3f   :  { %305 = vmatprep.mubr.bf16.mxu0 %v2246_v5 }
  0x45   :  { %1860 = vmatmul.mubr.msk.bf16.gmra.mrb[24].mxu1 %vm185_vm1, %v2217_v23 }
  0x46   :  { %1602 = vmatmul.mubr.msk.bf16.gmra.mrb[24].mxu0 %vm185_vm1, %v2217_v23  ;;  %1863 = vmatprep.mubr.msk.bf16.mxu1 %vm2245_vm0, %v2244_v1 }
  0x47   :  { %315 = vmatprep.mubr.bf16.mxu0 %v2246_v5 }
  0x4d   :  { %1864 = vmatmul.mubr.msk.bf16.gmra.mrb[28].mxu1 %vm185_vm1, %v2218_v24 }
  0x4e   :  { %1603 = vmatmul.mubr.msk.bf16.gmra.mrb[28].mxu0 %vm185_vm1, %v2218_v24  ;;  %1867 = vmatprep.mubr.msk.bf16.mxu1 %vm2245_vm0, %v2244_v1 }
  0x4f   :  { %325 = vmatprep.mubr.bf16.mxu0 %v2246_v5 }
  0x55   :  { %1868 = vmatmul.mubr.msk.bf16.gmra.mrb[32].mxu1 %vm185_vm1, %v2219_v25 }
  0x56   :  { %1604 = vmatmul.mubr.msk.bf16.gmra.mrb[32].mxu0 %vm185_vm1, %v2219_v25  ;;  %1616 = vmatprep.mubr.msk.f32.mxu1 %vm560_vm2, %v558_v28 }
  0x57   :  { %1615 = vmatprep.mubr.msk.f32.mxu0 %vm560_vm2, %v558_v28 }
  0xe8   :  { %v370_v29 = vpop.f32.mrb[0].mxu1 }
  0xe9   :  { %v443_v30 = vand.u32 2147483647, %v370_v29  ;;  %v1837_v31 = vpop.f32.mrb[1].mxu1  ;;  %v247_v32 = vpop.f32.mrb[0].mxu0 }
  0xea   :  { %v373_v33 = vpop.f32.mrb[2].mxu1  ;;  %v441_v34 = vand.u32 2147483647, %v247_v32  ;;  %v249_v35 = vpop.f32.mrb[1].mxu0 }
  0xeb   :  { %v446_v36 = vand.u32 2147483647, %v373_v33  ;;  %v1838_v37 = vpop.f32.mrb[3].mxu1  ;;  %v442_v38 = vand.u32 2147483647, %v249_v35  ;;  %v251_v39 = vpop.f32.mrb[2].mxu0 }
  0xec   :  { %v497_v40 = vmin.f32 %v443_v30, 8.0  ;;  %v495_v42 = vmin.f32 %v441_v34, 8.0  ;;  %v444_v43 = vand.u32 2147483647, %v251_v39  ;;  %v253_v44 = vpop.f32.mrb[3].mxu0 }
  0xed   :  { %v500_v41 = vmin.f32 %v446_v36, 8.0  ;;  %v496_v45 = vmin.f32 %v442_v38, 8.0  ;;  %v445_v46 = vand.u32 2147483647, %v253_v44 }
  0xee   :  { %v498_v48 = vmin.f32 %v444_v43, 8.0 }
  0xef   :  { %v2411_v47 = vpack.c.bf16 %v500_v41, %v497_v40  ;;  %v499_v50 = vmin.f32 %v445_v46, 8.0 }
  0xf0   :  { %v378_v49 = vpop.f32.mrb[4].mxu1  ;;  %v2414_v53 = vpack.c.bf16 %v498_v48, %v495_v42 }
  0xf1   :  { %v449_v51 = vand.u32 2147483647, %v378_v49  ;;  %v1841_v52 = vpop.f32.mrb[5].mxu1  ;;  %1930 = vmatpush1.bf16.msra.mxu1 %v2411_v47  ;;  %v257_v54 = vpop.f32.mrb[4].mxu0  ;;  %v2417_v56 = vpack.c.bf16 %v499_v50, %v496_v45 }
  0xf2   :  { %v381_v55 = vpop.f32.mrb[6].mxu1  ;;  %1931 = vmatprep.subr.bf16.mxu1 %v2247_v26  ;;  %v447_v57 = vand.u32 2147483647, %v257_v54  ;;  %v259_v58 = vpop.f32.mrb[5].mxu0 }
  0xf3   :  { %v452_v59 = vand.u32 2147483647, %v381_v55  ;;  %v1842_v60 = vpop.f32.mrb[7].mxu1  ;;  %v448_v61 = vand.u32 2147483647, %v259_v58  ;;  %v261_v62 = vpop.f32.mrb[6].mxu0  ;;  %1893 = vmatprep.subr.bf16.mxu0 %v2417_v56 }
  0xf4   :  { %v503_v63 = vmin.f32 %v449_v51, 8.0  ;;  %v501_v2 = vmin.f32 %v447_v57, 8.0  ;;  %v450_v3 = vand.u32 2147483647, %v261_v62  ;;  %v263_v4 = vpop.f32.mrb[7].mxu0  ;;  %1895 = vmatpush1.bf16.msra.mxu0 %v2414_v53 }
  0xf5   :  { %v506_v0 = vmin.f32 %v452_v59, 8.0  ;;  %v502_v5 = vmin.f32 %v448_v61, 8.0  ;;  %v451_v6 = vand.u32 2147483647, %v263_v4 }
  0xf6   :  { %v504_v8 = vmin.f32 %v450_v3, 8.0 }
  0xf7   :  { %v2421_v7 = vpack.c.bf16 %v506_v0, %v503_v63  ;;  %v505_v10 = vmin.f32 %v451_v6, 8.0 }
  0xf8   :  { %v386_v9 = vpop.f32.mrb[8].mxu1  ;;  %v2424_v13 = vpack.c.bf16 %v504_v8, %v501_v2 }
  0xf9   :  { %v455_v11 = vand.u32 2147483647, %v386_v9  ;;  %v1845_v12 = vpop.f32.mrb[9].mxu1  ;;  %1933 = vmatpush1.bf16.msra.mxu1 %v2421_v7  ;;  %v267_v14 = vpop.f32.mrb[8].mxu0  ;;  %v2427_v16 = vpack.c.bf16 %v505_v10, %v502_v5 }
  0xfa   :  { %v389_v15 = vpop.f32.mrb[10].mxu1  ;;  %1934 = vmatprep.subr.bf16.mxu1 %v2247_v26  ;;  %v453_v17 = vand.u32 2147483647, %v267_v14  ;;  %v269_v18 = vpop.f32.mrb[9].mxu0 }
  0xfb   :  { %v458_v19 = vand.u32 2147483647, %v389_v15  ;;  %v1846_v20 = vpop.f32.mrb[11].mxu1  ;;  %v454_v21 = vand.u32 2147483647, %v269_v18  ;;  %v271_v22 = vpop.f32.mrb[10].mxu0  ;;  %1897 = vmatprep.subr.bf16.mxu0 %v2427_v16 }
  0xfc   :  { %v509_v23 = vmin.f32 %v455_v11, 8.0  ;;  %v507_v25 = vmin.f32 %v453_v17, 8.0  ;;  %v456_v28 = vand.u32 2147483647, %v271_v22  ;;  %v273_v29 = vpop.f32.mrb[11].mxu0  ;;  %1899 = vmatpush1.bf16.msra.mxu0 %v2424_v13 }
  0xfd   :  { %v512_v24 = vmin.f32 %v458_v19, 8.0  ;;  %v508_v30 = vmin.f32 %v454_v21, 8.0  ;;  %v457_v31 = vand.u32 2147483647, %v273_v29 }
  0xfe   :  { %v510_v33 = vmin.f32 %v456_v28, 8.0 }
  0xff   :  { %v2431_v32 = vpack.c.bf16 %v512_v24, %v509_v23  ;;  %v511_v35 = vmin.f32 %v457_v31, 8.0 }
 0x100   :  { %v394_v34 = vpop.f32.mrb[12].mxu1  ;;  %v2434_v38 = vpack.c.bf16 %v510_v33, %v507_v25 }
 0x101   :  { %v461_v36 = vand.u32 2147483647, %v394_v34  ;;  %v1849_v37 = vpop.f32.mrb[13].mxu1  ;;  %1936 = vmatpush1.bf16.msra.mxu1 %v2431_v32  ;;  %v277_v39 = vpop.f32.mrb[12].mxu0  ;;  %v2437_v41 = vpack.c.bf16 %v511_v35, %v508_v30 }
 0x102   :  { %v397_v40 = vpop.f32.mrb[14].mxu1  ;;  %1937 = vmatprep.subr.bf16.mxu1 %v2247_v26  ;;  %v459_v42 = vand.u32 2147483647, %v277_v39  ;;  %v279_v43 = vpop.f32.mrb[13].mxu0 }
 0x103   :  { %v464_v44 = vand.u32 2147483647, %v397_v40  ;;  %v1850_v45 = vpop.f32.mrb[15].mxu1  ;;  %v460_v46 = vand.u32 2147483647, %v279_v43  ;;  %v281_v48 = vpop.f32.mrb[14].mxu0  ;;  %1901 = vmatprep.subr.bf16.mxu0 %v2437_v41 }
 0x104   :  { %v515_v49 = vmin.f32 %v461_v36, 8.0  ;;  %v513_v51 = vmin.f32 %v459_v42, 8.0  ;;  %v462_v52 = vand.u32 2147483647, %v281_v48  ;;  %v283_v54 = vpop.f32.mrb[15].mxu0  ;;  %1903 = vmatpush1.bf16.msra.mxu0 %v2434_v38 }
 0x105   :  { %v518_v50 = vmin.f32 %v464_v44, 8.0  ;;  %v514_v55 = vmin.f32 %v460_v46, 8.0  ;;  %v463_v57 = vand.u32 2147483647, %v283_v54 }
 0x106   :  { %v516_v59 = vmin.f32 %v462_v52, 8.0 }
 0x107   :  { %v2441_v58 = vpack.c.bf16 %v518_v50, %v515_v49  ;;  %v517_v61 = vmin.f32 %v463_v57, 8.0 }
 0x108   :  { %v402_v60 = vpop.f32.mrb[16].mxu1  ;;  %v2444_v0 = vpack.c.bf16 %v516_v59, %v513_v51 }
 0x109   :  { %v467_v62 = vand.u32 2147483647, %v402_v60  ;;  %v1853_v63 = vpop.f32.mrb[17].mxu1  ;;  %1939 = vmatpush1.bf16.msra.mxu1 %v2441_v58  ;;  %v287_v2 = vpop.f32.mrb[16].mxu0  ;;  %v2447_v4 = vpack.c.bf16 %v517_v61, %v514_v55 }
 0x10a   :  { %v405_v3 = vpop.f32.mrb[18].mxu1  ;;  %1940 = vmatprep.subr.bf16.mxu1 %v2247_v26  ;;  %v465_v5 = vand.u32 2147483647, %v287_v2  ;;  %v289_v6 = vpop.f32.mrb[17].mxu0 }
 0x10b   :  { %v470_v8 = vand.u32 2147483647, %v405_v3  ;;  %v1854_v9 = vpop.f32.mrb[19].mxu1  ;;  %v466_v10 = vand.u32 2147483647, %v289_v6  ;;  %v291_v11 = vpop.f32.mrb[18].mxu0  ;;  %1905 = vmatprep.subr.bf16.mxu0 %v2447_v4 }
 0x10c   :  { %v521_v12 = vmin.f32 %v467_v62, 8.0  ;;  %v519_v15 = vmin.f32 %v465_v5, 8.0  ;;  %v468_v17 = vand.u32 2147483647, %v291_v11  ;;  %v293_v18 = vpop.f32.mrb[19].mxu0  ;;  %1907 = vmatpush1.bf16.msra.mxu0 %v2444_v0 }
 0x10d   :  { %v524_v14 = vmin.f32 %v470_v8, 8.0  ;;  %v520_v19 = vmin.f32 %v466_v10, 8.0  ;;  %v469_v20 = vand.u32 2147483647, %v293_v18 }
 0x10e   :  { %v522_v22 = vmin.f32 %v468_v17, 8.0 }
 0x10f   :  { %v2451_v21 = vpack.c.bf16 %v524_v14, %v521_v12  ;;  %v523_v24 = vmin.f32 %v469_v20, 8.0 }
 0x110   :  { %v410_v23 = vpop.f32.mrb[20].mxu1  ;;  %v2454_v29 = vpack.c.bf16 %v522_v22, %v519_v15 }
 0x111   :  { %v473_v25 = vand.u32 2147483647, %v410_v23  ;;  %v1857_v28 = vpop.f32.mrb[21].mxu1  ;;  %1942 = vmatpush1.bf16.msra.mxu1 %v2451_v21  ;;  %v297_v30 = vpop.f32.mrb[20].mxu0  ;;  %v2457_v33 = vpack.c.bf16 %v523_v24, %v520_v19 }
 0x112   :  { %v413_v31 = vpop.f32.mrb[22].mxu1  ;;  %1943 = vmatprep.subr.bf16.mxu1 %v2247_v26  ;;  %v471_v34 = vand.u32 2147483647, %v297_v30  ;;  %v299_v35 = vpop.f32.mrb[21].mxu0 }
 0x113   :  { %v476_v36 = vand.u32 2147483647, %v413_v31  ;;  %v1858_v37 = vpop.f32.mrb[23].mxu1  ;;  %v472_v39 = vand.u32 2147483647, %v299_v35  ;;  %v301_v40 = vpop.f32.mrb[22].mxu0  ;;  %1909 = vmatprep.subr.bf16.mxu0 %v2457_v33 }
 0x114   :  { %v527_v42 = vmin.f32 %v473_v25, 8.0  ;;  %v525_v44 = vmin.f32 %v471_v34, 8.0  ;;  %v474_v45 = vand.u32 2147483647, %v301_v40  ;;  %v303_v46 = vpop.f32.mrb[23].mxu0  ;;  %1911 = vmatpush1.bf16.msra.mxu0 %v2454_v29 }
 0x115   :  { %v530_v43 = vmin.f32 %v476_v36, 8.0  ;;  %v526_v48 = vmin.f32 %v472_v39, 8.0  ;;  %v475_v49 = vand.u32 2147483647, %v303_v46 }
 0x116   :  { %v528_v51 = vmin.f32 %v474_v45, 8.0 }
 0x117   :  { %v2461_v50 = vpack.c.bf16 %v530_v43, %v527_v42  ;;  %v529_v54 = vmin.f32 %v475_v49, 8.0 }
 0x118   :  { %v418_v52 = vpop.f32.mrb[24].mxu1  ;;  %v2464_v59 = vpack.c.bf16 %v528_v51, %v525_v44 }
 0x119   :  { %v479_v55 = vand.u32 2147483647, %v418_v52  ;;  %v1861_v57 = vpop.f32.mrb[25].mxu1  ;;  %1945 = vmatpush1.bf16.msra.mxu1 %v2461_v50  ;;  %v307_v60 = vpop.f32.mrb[24].mxu0  ;;  %v2466_v62 = vpack.c.bf16 %v529_v54, %v526_v48 }
 0x11a   :  { %v421_v61 = vpop.f32.mrb[26].mxu1  ;;  %1946 = vmatprep.subr.bf16.mxu1 %v2247_v26  ;;  %v477_v63 = vand.u32 2147483647, %v307_v60  ;;  %v309_v2 = vpop.f32.mrb[25].mxu0 }
 0x11b   :  { %v482_v3 = vand.u32 2147483647, %v421_v61  ;;  %v1862_v5 = vpop.f32.mrb[27].mxu1  ;;  %v478_v6 = vand.u32 2147483647, %v309_v2  ;;  %v311_v8 = vpop.f32.mrb[26].mxu0  ;;  %1913 = vmatprep.subr.bf16.mxu0 %v2466_v62 }
 0x11c   :  { %v533_v9 = vmin.f32 %v479_v55, 8.0  ;;  %v531_v11 = vmin.f32 %v477_v63, 8.0  ;;  %v480_v12 = vand.u32 2147483647, %v311_v8  ;;  %v313_v14 = vpop.f32.mrb[27].mxu0  ;;  %1915 = vmatpush1.bf16.msra.mxu0 %v2464_v59 }
 0x11d   :  { %v536_v10 = vmin.f32 %v482_v3, 8.0  ;;  %v532_v15 = vmin.f32 %v478_v6, 8.0  ;;  %v481_v17 = vand.u32 2147483647, %v313_v14 }
 0x11e   :  { %v534_v19 = vmin.f32 %v480_v12, 8.0 }
 0x11f   :  { %v2471_v18 = vpack.c.bf16 %v536_v10, %v533_v9  ;;  %v535_v22 = vmin.f32 %v481_v17, 8.0 }
 0x120   :  { %v426_v20 = vpop.f32.mrb[28].mxu1  ;;  %v2474_v25 = vpack.c.bf16 %v534_v19, %v531_v11 }
 0x121   :  { %v485_v23 = vand.u32 2147483647, %v426_v20  ;;  %v1865_v24 = vpop.f32.mrb[29].mxu1  ;;  %1948 = vmatpush1.bf16.msra.mxu1 %v2471_v18  ;;  %v317_v28 = vpop.f32.mrb[28].mxu0  ;;  %v2476_v31 = vpack.c.bf16 %v535_v22, %v532_v15 }
 0x122   :  { %v429_v30 = vpop.f32.mrb[30].mxu1  ;;  %v483_v34 = vand.u32 2147483647, %v317_v28  ;;  %v319_v35 = vpop.f32.mrb[29].mxu0  ;;  %1949 = vmatprep.subr.bf16.mxu1 %v2247_v26 }
 0x123   :  { %v488_v36 = vand.u32 2147483647, %v429_v30  ;;  %v1866_v37 = vpop.f32.mrb[31].mxu1  ;;  %v484_v39 = vand.u32 2147483647, %v319_v35  ;;  %v321_v40 = vpop.f32.mrb[30].mxu0  ;;  %1917 = vmatprep.subr.bf16.mxu0 %v2476_v31 }
 0x124   :  { %v539_v42 = vmin.f32 %v485_v23, 8.0  ;;  %v537_v44 = vmin.f32 %v483_v34, 8.0  ;;  %v486_v45 = vand.u32 2147483647, %v321_v40  ;;  %v323_v46 = vpop.f32.mrb[31].mxu0  ;;  %1919 = vmatpush1.bf16.msra.mxu0 %v2474_v25  ;;  %v1638_v37 = vld [vmem:[%s2942_s3 + $0x198] sm:$0xff] }
 0x125   :  { %v542_v43 = vmin.f32 %v488_v36, 8.0  ;;  %v538_v48 = vmin.f32 %v484_v39, 8.0  ;;  %v487_v49 = vand.u32 2147483647, %v323_v46  ;;  %v1621_v40 = vld [vmem:[%s2942_s3 + $0x110] sm:$0xff] }
 0x126   :  { %v540_v52 = vmin.f32 %v486_v45, 8.0  ;;  %v2496_v30 = vld.sshfl [vmem:[%s2941_s2 + $0x4] sm:$0x33 pattern:$0x76325410] }
 0x127   :  { %v2481_v51 = vpack.c.bf16 %v542_v43, %v539_v42  ;;  %v541_v54 = vmin.f32 %v487_v49, 8.0  ;;  %v748_v36 = vcombine.high %v2496_v30, %v2496_v30  ;;  %v1622_v42 = vld [vmem:[%s2942_s3 + $0x118] sm:$0xff]  ;;  %v1639_v43 = vld [vmem:[%s2942_s3 + $0x1a0] sm:$0xff]  ;;  %v1624_v49 = vld [vmem:[%s2942_s3 + $0x128] sm:$0xff] }
 0x128   :  { %v434_v55 = vpop.f32.mrb[32].mxu1  ;;  %v2483_v57 = vpack.c.bf16 %v540_v52, %v537_v44  ;;  %v1640_v44 = vld [vmem:[%s2942_s3 + $0x1a8] sm:$0xff]  ;;  %v2020_v45 = vpack.c.bf16 %v1622_v42, %v1621_v40  ;;  %v1641_v52 = vld [vmem:[%s2942_s3 + $0x1b0] sm:$0xff] }
 0x129   :  { %v491_v60 = vand.u32 2147483647, %v434_v55  ;;  %v327_v61 = vpop.f32.mrb[32].mxu0  ;;  %v1869_v63 = vpop.f32.mrb[33].mxu1  ;;  %1951 = vmatpush1.bf16.msra.mxu1 %v2481_v51  ;;  %v2486_v2 = vpack.c.bf16 %v541_v54, %v538_v48  ;;  %v2022_v46 = vpack.c.bf16 %v1640_v44, %v1639_v43  ;;  %v1623_v48 = vld [vmem:[%s2942_s3 + $0x120] sm:$0xff]  ;;  %v1642_v54 = vld [vmem:[%s2942_s3 + $0x1b8] sm:$0xff] }
 0x12a   :  { %v489_v3 = vand.u32 2147483647, %v327_v61  ;;  %v329_v5 = vpop.f32.mrb[33].mxu0  ;;  %v437_v6 = vpop.f32.mrb[34].mxu1  ;;  %1952 = vmatprep.subr.bf16.mxu1 %v2247_v26  ;;  %v2024_v55 = vpack.c.bf16 %v1624_v49, %v1623_v48  ;;  %v1625_v61 = vld [vmem:[%s2942_s3 + $0x130] sm:$0xff]  ;;  %v1626_v63 = vld [vmem:[%s2942_s3 + $0x138] sm:$0xff] }
 0x12b   :  { %v490_v8 = vand.u32 2147483647, %v329_v5  ;;  %v494_v9 = vand.u32 2147483647, %v437_v6  ;;  %v331_v10 = vpop.f32.mrb[34].mxu0  ;;  %v1870_v14 = vpop.f32.mrb[35].mxu1  ;;  %1921 = vmatprep.subr.bf16.mxu0 %v2486_v2  ;;  %v2028_v6 = vpack.c.bf16 %v1626_v63, %v1625_v61 }
 0x12c   :  { %v543_v11 = vmin.f32 %v489_v3, 8.0  ;;  %v492_v12 = vand.u32 2147483647, %v331_v10  ;;  %v333_v15 = vpop.f32.mrb[35].mxu0  ;;  %v545_v17 = vmin.f32 %v491_v60, 8.0  ;;  %1923 = vmatpush1.bf16.msra.mxu0 %v2483_v57  ;;  %v2026_v60 = vpack.c.bf16 %v1642_v54, %v1641_v52  ;;  %v1643_v3 = vld [vmem:[%s2942_s3 + $0x1c0] sm:$0xff] }
 0x12d   :  { %v544_v19 = vmin.f32 %v490_v8, 8.0  ;;  %v548_v20 = vmin.f32 %v494_v9, 8.0  ;;  %v493_v22 = vand.u32 2147483647, %v333_v15  ;;  %v1644_v5 = vld [vmem:[%s2942_s3 + $0x1c8] sm:$0xff]  ;;  %v1627_v9 = vld [vmem:[%s2942_s3 + $0x140] sm:$0xff] }
 0x12e   :  { %v546_v23 = vmin.f32 %v492_v12, 8.0  ;;  %v2030_v8 = vpack.c.bf16 %v1644_v5, %v1643_v3  ;;  %v1628_v10 = vld [vmem:[%s2942_s3 + $0x148] sm:$0xff]  ;;  %v1646_v12 = vld [vmem:[%s2942_s3 + $0x1d8] sm:$0xff]  ;;  %v1633_v42 = vld [vmem:[%s2942_s3 + $0x170] sm:$0xff] }
 0x12f   :  { %v2491_v24 = vpack.c.bf16 %v548_v20, %v545_v17  ;;  %v547_v28 = vmin.f32 %v493_v22, 8.0  ;;  %v2032_v14 = vpack.c.bf16 %v1628_v10, %v1627_v9  ;;  %v1629_v17 = vld [vmem:[%s2942_s3 + $0x150] sm:$0xff]  ;;  %v1647_v20 = vld [vmem:[%s2942_s3 + $0x1e0] sm:$0xff]  ;;  %v1648_v22 = vld [vmem:[%s2942_s3 + $0x1e8] sm:$0xff] }
 0x130   :  { %v2498_v34 = vpack.c.bf16 %v546_v23, %v543_v11  ;;  %v1645_v11 = vld [vmem:[%s2942_s3 + $0x1d0] sm:$0xff]  ;;  %v1634_v43 = vld [vmem:[%s2942_s3 + $0x178] sm:$0xff]  ;;  %v1651_v44 = vld [vmem:[%s2942_s3 + $0x200] sm:$0xff] }
 0x131   :  { %v2500_v35 = vpack.c.bf16 %v547_v28, %v544_v19  ;;  %1954 = vmatpush1.bf16.msra.mxu1 %v2491_v24  ;;  %v2034_v15 = vpack.c.bf16 %v1646_v12, %v1645_v11  ;;  %v1630_v19 = vld [vmem:[%s2942_s3 + $0x158] sm:$0xff]  ;;  %v2038_v28 = vpack.c.bf16 %v1648_v22, %v1647_v20  ;;  %v1635_v49 = vld [vmem:[%s2942_s3 + $0x180] sm:$0xff]  ;;  %v1636_v52 = vld [vmem:[%s2942_s3 + $0x188] sm:$0xff] }
 0x132   :  { %1991 = vmatprep.subr.bf16.mxu1 %v2247_v26  ;;  %v2036_v23 = vpack.c.bf16 %v1630_v19, %v1629_v17  ;;  %v2048_v54 = vpack.c.bf16 %v1636_v52, %v1635_v49  ;;  %v720_v63 = vld [vmem:[%s2942_s3 + $0x80] sm:$0xff]  ;;  %v721_v3 = vld [vmem:[%s2942_s3 + $0x88] sm:$0xff]  ;;  %v722_v12 = vld [vmem:[%s2942_s3 + $0x90] sm:$0xff] }
 0x133   :  { %1925 = vmatprep.subr.bf16.mxu0 %v2500_v35  ;;  %v2053_v5 = vpack.c.bf16 %v721_v3, %v720_v63  ;;  %v704_v10 = vld [vmem:[%s2942_s3] sm:$0xff]  ;;  %v705_v11 = vld [vmem:[%s2942_s3 + $0x8] sm:$0xff]  ;;  %v706_v19 = vld [vmem:[%s2942_s3 + $0x10] sm:$0xff] }
 0x134   :  { %1927 = vmatpush1.bf16.msra.mxu0 %v2498_v34  ;;  %699 = vmatmul.mubr.f32.vlgmr.msra.gmra.mrb[36].mxu1 %v2405_v27  ;;  %v707_v20 = vld [vmem:[%s2942_s3 + $0x18] sm:$0xff]  ;;  %v710_v52 = vld [vmem:[%s2942_s3 + $0x30] sm:$0xff]  ;;  %v713_v63 = vld [vmem:[%s2942_s3 + $0x48] sm:$0xff] }
 0x135   :  { %1956 = vmatprep.subr.bf16.mxu0 %v2417_v56  ;;  %1993 = vmatpush1.bf16.msra.mxu1 %v2411_v47  ;;  %v730_v3 = vld [vmem:[%s2942_s3 + $0xd0] sm:$0xff] }
 0x136   :  { %1994 = vmatprep.subr.bf16.mxu1 %v2247_v26  ;;  %1620 = vmatprep.mubr.msk.f32.mxu1 %vm560_vm2, %v748_v36 }
 0x137   :  { %628 = vmatmul.mubr.f32.vlgmr.msra.gmra.mrb[36].mxu0 %v2405_v27  ;;  %v1637_v27 = vld [vmem:[%s2942_s3 + $0x190] sm:$0xff] }
 0x138   :  { %1958 = vmatpush1.bf16.msra.mxu0 %v2414_v53  ;;  %1619 = vmatprep.mubr.msk.f32.mxu0 %vm560_vm2, %v748_v36  ;;  %v2018_v39 = vpack.c.bf16 %v1638_v37, %v1637_v27  ;;  %v1632_v36 = vld [vmem:[%s2942_s3 + $0x168] sm:$0xff]  ;;  %v1649_v27 = vld [vmem:[%s2942_s3 + $0x1f0] sm:$0xff]  ;;  %v1650_v37 = vld [vmem:[%s2942_s3 + $0x1f8] sm:$0xff] }
 0x139   :  { %1960 = vmatprep.subr.bf16.mxu0 %v2427_v16  ;;  %1996 = vmatpush1.bf16.msra.mxu1 %v2421_v7  ;;  %v2042_v40 = vpack.c.bf16 %v1650_v37, %v1649_v27  ;;  %v2059_v27 = vpack.c.bf16 %v707_v20, %v706_v19  ;;  %v718_v20 = vld [vmem:[%s2942_s3 + $0x70] sm:$0xff] }
 0x13a   :  { %1997 = vmatprep.subr.bf16.mxu1 %v2247_v26 }
 0x13c   :  { %1962 = vmatpush1.bf16.msra.mxu0 %v2424_v13 }
 0x13d   :  { %1964 = vmatprep.subr.bf16.mxu0 %v2437_v41  ;;  %1999 = vmatpush1.bf16.msra.mxu1 %v2431_v32 }
 0x13e   :  { %2000 = vmatprep.subr.bf16.mxu1 %v2247_v26 }
 0x140   :  { %1966 = vmatpush1.bf16.msra.mxu0 %v2434_v38 }
 0x141   :  { %1968 = vmatprep.subr.bf16.mxu0 %v2447_v4  ;;  %2002 = vmatpush1.bf16.msra.mxu1 %v2441_v58 }
 0x142   :  { %2003 = vmatprep.subr.bf16.mxu1 %v2247_v26 }
 0x144   :  { %1970 = vmatpush1.bf16.msra.mxu0 %v2444_v0 }
 0x145   :  { %1972 = vmatprep.subr.bf16.mxu0 %v2457_v33  ;;  %2005 = vmatpush1.bf16.msra.mxu1 %v2451_v21 }
 0x146   :  { %2006 = vmatprep.subr.bf16.mxu1 %v2247_v26 }
 0x148   :  { %1974 = vmatpush1.bf16.msra.mxu0 %v2454_v29 }
 0x149   :  { %1976 = vmatprep.subr.bf16.mxu0 %v2466_v62  ;;  %2008 = vmatpush1.bf16.msra.mxu1 %v2461_v50 }
 0x14a   :  { %2009 = vmatprep.subr.bf16.mxu1 %v2247_v26 }
 0x14c   :  { %1978 = vmatpush1.bf16.msra.mxu0 %v2464_v59 }
 0x14d   :  { %1980 = vmatprep.subr.bf16.mxu0 %v2476_v31  ;;  %2011 = vmatpush1.bf16.msra.mxu1 %v2471_v18 }
 0x14e   :  { %2012 = vmatprep.subr.bf16.mxu1 %v2247_v26 }
 0x150   :  { %1982 = vmatpush1.bf16.msra.mxu0 %v2474_v25 }
 0x151   :  { %1984 = vmatprep.subr.bf16.mxu0 %v2486_v2  ;;  %2014 = vmatpush1.bf16.msra.mxu1 %v2481_v51 }
 0x152   :  { %2015 = vmatprep.subr.bf16.mxu1 %v2247_v26 }
 0x154   :  { %1986 = vmatpush1.bf16.msra.mxu0 %v2483_v57 }
 0x155   :  { %1988 = vmatprep.subr.bf16.mxu0 %v2500_v35  ;;  %2017 = vmatpush1.bf16.msra.mxu1 %v2491_v24 }
 0x156   :  { %2050 = vmatprep.subr.bf16.mxu1 %v2247_v26 }
 0x158   :  { %1990 = vmatpush1.bf16.msra.mxu0 %v2498_v34  ;;  %888 = vmatmul.mubr.f32.vlgmr.msra.gmra.mrb[38].mxu1 %v2496_v30 }
 0x159   :  { %2019 = vmatprep.subr.bf16.mxu0 %v2018_v39  ;;  %1875 = vmatprep.mubr.msk.f32.mxu1 %vm2245_vm0, %v2244_v1 }
 0x15b   :  { %817 = vmatmul.mubr.f32.vlgmr.msra.gmra.mrb[38].mxu0 %v2496_v30  ;;  %v1631_v30 = vld [vmem:[%s2942_s3 + $0x160] sm:$0xff] }
 0x15c   :  { %2021 = vmatpush3.bf16.msra.mxu0 %v2020_v45  ;;  %v2040_v39 = vpack.c.bf16 %v1632_v36, %v1631_v30  ;;  %v1652_v45 = vld [vmem:[%s2942_s3 + $0x208] sm:$0xff] }
 0x15d   :  { %2023 = vmatprep.subr.bf16.mxu0 %v2022_v46  ;;  %v2044_v46 = vpack.c.bf16 %v1634_v43, %v1633_v42  ;;  %v2046_v48 = vpack.c.bf16 %v1652_v45, %v1651_v44  ;;  %v2693_v36 = vld.sshfl [vmem:[%s2941_s2 + $0x8] sm:$0x33 pattern:$0x76325410]  ;;  %v726_v44 = vld [vmem:[%s2942_s3 + $0xb0] sm:$0xff]  ;;  %v727_v45 = vld [vmem:[%s2942_s3 + $0xb8] sm:$0xff] }
 0x15e   :  { %v709_v42 = vld [vmem:[%s2942_s3 + $0x28] sm:$0xff]  ;;  %v2065_v49 = vpack.c.bf16 %v727_v45, %v726_v44  ;;  %v1687_v44 = vld [vmem:[%s2942_s3 + $0x2f0] sm:$0xff]  ;;  %v1688_v45 = vld [vmem:[%s2942_s3 + $0x2f8] sm:$0xff]  ;;  %s1564_s2 = sshll.u32 %s2248_s6, 4  ;;  %s1565_s2 = int_to_ptr.vmem [resolvable:$true] %s1564_s2 }
 0x15f   :  { %s2220_s7 = scalar_lea.vmem %s1565_s2, 32  ;;  %p2225_p1 = scmp.lt.s32.totalorder %s1565_s2, %s1565_s2 }
 0x160   :  { %2025 = vmatpush3.bf16.msra.mxu0 %v2024_v55  ;;  %v1653_v55 = vld [vmem:[%s2942_s3 + $0x210] sm:$0xff]  ;;  %p2221_p0 = scmp.ne.s32.totalorder %s1565_s2, %s2220_s7  ;;  %p2226_p2 = scmp.lt.s32.totalorder %s2220_s7, %s2220_s7 }
 0x161   :  { %2027 = vmatprep.subr.bf16.mxu0 %v2026_v60  ;;  %v1654_v60 = vld [vmem:[%s2942_s3 + $0x218] sm:$0xff] }
 0x162   :  { %v2051_v61 = vpack.c.bf16 %v1654_v60, %v1653_v55  ;;  %v728_v55 = vld [vmem:[%s2942_s3 + $0xc0] sm:$0xff]  ;;  %p2227_p3 = por %p2226_p2, %p2225_p1 }
 0x164   :  { %2029 = vmatpush3.bf16.msra.mxu0 %v2028_v6  ;;  %2052 = vmatpush3.bf16.msra.mxu1 %v2051_v61  ;;  %p2228_p4 = pnand %p2227_p3, %p2221_p0 }
 0x165   :  { %2031 = vmatprep.subr.bf16.mxu0 %v2030_v8  ;;  %2054 = vmatprep.subr.bf16.mxu1 %v2053_v5 }
 0x168   :  { %2033 = vmatpush3.bf16.msra.mxu0 %v2032_v14  ;;  %v723_v14 = vld [vmem:[%s2942_s3 + $0x98] sm:$0xff] }
 0x169   :  { %2035 = vmatprep.subr.bf16.mxu0 %v2034_v15  ;;  %v2055_v15 = vpack.c.bf16 %v705_v11, %v704_v10  ;;  %v2057_v17 = vpack.c.bf16 %v723_v14, %v722_v12  ;;  %v732_v10 = vld [vmem:[%s2942_s3 + $0xe0] sm:$0xff] }
 0x16a   :  { %v716_v14 = vld [vmem:[%s2942_s3 + $0x60] sm:$0xff] }
 0x16c   :  { %2037 = vmatpush3.bf16.msra.mxu0 %v2036_v23  ;;  %v724_v23 = vld [vmem:[%s2942_s3 + $0xa0] sm:$0xff] }
 0x16d   :  { %2039 = vmatprep.subr.bf16.mxu0 %v2038_v28  ;;  %v725_v28 = vld [vmem:[%s2942_s3 + $0xa8] sm:$0xff] }
 0x170   :  { %2041 = vmatpush3.bf16.msra.mxu0 %v2040_v39  ;;  %v2061_v39 = vpack.c.bf16 %v725_v28, %v724_v23  ;;  %v737_v23 = vld [vmem:[%s2942_s3 + $0x108] sm:$0xff] }
 0x171   :  { %2043 = vmatprep.subr.bf16.mxu0 %v2042_v40  ;;  %v708_v40 = vld [vmem:[%s2942_s3 + $0x20] sm:$0xff] }
 0x174   :  { %2045 = vmatpush3.bf16.msra.mxu0 %v2044_v46  ;;  %v2709_v46 = vcombine.high %v2693_v36, %v2693_v36 }
 0x175   :  { %2047 = vmatprep.subr.bf16.mxu0 %v2046_v48  ;;  %v2063_v48 = vpack.c.bf16 %v709_v42, %v708_v40  ;;  %v1669_v42 = vld [vmem:[%s2942_s3 + $0x260] sm:$0xff] }
 0x178   :  { %2049 = vmatpush3.bf16.msra.mxu0 %v2048_v54  ;;  %v711_v54 = vld [vmem:[%s2942_s3 + $0x38] sm:$0xff] }
 0x179   :  { %2089 = vmatprep.subr.bf16.mxu0 %v2417_v56  ;;  %v2067_v60 = vpack.c.bf16 %v711_v54, %v710_v52  ;;  %v2171_v54 = vpack.c.bf16 %v1688_v45, %v1687_v44 }
 0x207   :  { %v2661_v56 = vpop.f32.mrb[36].mxu1 }
 0x208   :  { %v702_v6 = vpop.f32.mrb[37].mxu1 }
 0x20a   :  { %v2663_v8 = vpop.f32.mrb[36].mxu0 }
 0x20b   :  { %v631_v9 = vpop.f32.mrb[37].mxu0 }
 0x22b   :  { %v889_v22 = vpop.f32.mrb[38].mxu1 }
 0x22c   :  { %1876 = vmatmul.mubr.msk.f32.vlgmr.msra.gmra.mrb[40].mxu1 %vm560_vm2, %v889_v22  ;;  %v891_v30 = vpop.f32.mrb[39].mxu1 }
 0x22d   :  { %2056 = vmatpush3.bf16.msra.mxu1 %v2055_v15  ;;  %1138 = vmatprep.mubr.f32.mxu1 %v631_v9  ;;  %v714_v9 = vld [vmem:[%s2942_s3 + $0x50] sm:$0xff] }
 0x22e   :  { %v818_v37 = vpop.f32.mrb[38].mxu0  ;;  %2058 = vmatprep.subr.bf16.mxu1 %v2057_v17  ;;  %v734_v15 = vld [vmem:[%s2942_s3 + $0xf0] sm:$0xff] }
 0x22f   :  { %v820_v43 = vpop.f32.mrb[39].mxu0  ;;  %v1667_v30 = vld [vmem:[%s2942_s3 + $0x250] sm:$0xff] }
 0x230   :  { %995 = vmatprep.mubr.f32.mxu0 %v820_v43  ;;  %v1670_v43 = vld [vmem:[%s2942_s3 + $0x268] sm:$0xff] }
 0x231   :  { %2060 = vmatpush3.bf16.msra.mxu1 %v2059_v27  ;;  %996 = vmatmul.mubr.f32.vlgmr.msra.gmra.mrb[40].mxu0 %v818_v37  ;;  %v1685_v27 = vld [vmem:[%s2942_s3 + $0x2e0] sm:$0xff]  ;;  %v1686_v37 = vld [vmem:[%s2942_s3 + $0x2e8] sm:$0xff]  ;;  %v2169_v52 = vpack.c.bf16 %v1670_v43, %v1669_v42 }
 0x232   :  { %2091 = vmatpush1.bf16.msra.mxu0 %v2414_v53  ;;  %2062 = vmatprep.subr.bf16.mxu1 %v2061_v39  ;;  %v729_v53 = vld [vmem:[%s2942_s3 + $0xc8] sm:$0xff]  ;;  %v2167_v40 = vpack.c.bf16 %v1686_v37, %v1685_v27 }
 0x233   :  { %2093 = vmatprep.subr.bf16.mxu0 %v2427_v16  ;;  %1659 = vmatprep.mubr.msk.f32.mxu0 %vm560_vm2, %v2709_v46  ;;  %v2069_v61 = vpack.c.bf16 %v729_v53, %v728_v55  ;;  %v712_v16 = vld [vmem:[%s2942_s3 + $0x40] sm:$0xff]  ;;  %v1671_v55 = vld [vmem:[%s2942_s3 + $0x270] sm:$0xff]  ;;  %v1672_v53 = vld [vmem:[%s2942_s3 + $0x278] sm:$0xff] }
 0x234   :  { %v2071_v5 = vpack.c.bf16 %v713_v63, %v712_v16  ;;  %v2173_v16 = vpack.c.bf16 %v1672_v53, %v1671_v55 }
 0x235   :  { %2064 = vmatpush3.bf16.msra.mxu1 %v2063_v48  ;;  %v1694_v48 = vld [vmem:[%s2942_s3 + $0x328] sm:$0xff] }
 0x236   :  { %2095 = vmatpush1.bf16.msra.mxu0 %v2424_v13  ;;  %2066 = vmatprep.subr.bf16.mxu1 %v2065_v49  ;;  %v731_v13 = vld [vmem:[%s2942_s3 + $0xd8] sm:$0xff] }
 0x237   :  { %2097 = vmatprep.subr.bf16.mxu0 %v2437_v41  ;;  %v2073_v6 = vpack.c.bf16 %v731_v13, %v730_v3  ;;  %v715_v41 = vld [vmem:[%s2942_s3 + $0x58] sm:$0xff]  ;;  %v1673_v3 = vld [vmem:[%s2942_s3 + $0x280] sm:$0xff]  ;;  %v1674_v13 = vld [vmem:[%s2942_s3 + $0x288] sm:$0xff] }
 0x238   :  { %v2075_v11 = vpack.c.bf16 %v715_v41, %v714_v9  ;;  %v2177_v9 = vpack.c.bf16 %v1674_v13, %v1673_v3 }
 0x239   :  { %2068 = vmatpush3.bf16.msra.mxu1 %v2067_v60  ;;  %v1689_v60 = vld [vmem:[%s2942_s3 + $0x300] sm:$0xff] }
 0x23a   :  { %2099 = vmatpush1.bf16.msra.mxu0 %v2434_v38  ;;  %2070 = vmatprep.subr.bf16.mxu1 %v2069_v61  ;;  %v733_v38 = vld [vmem:[%s2942_s3 + $0xe8] sm:$0xff] }
 0x23b   :  { %2101 = vmatprep.subr.bf16.mxu0 %v2447_v4  ;;  %v2077_v12 = vpack.c.bf16 %v733_v38, %v732_v10  ;;  %v717_v4 = vld [vmem:[%s2942_s3 + $0x68] sm:$0xff]  ;;  %v1675_v10 = vld [vmem:[%s2942_s3 + $0x290] sm:$0xff]  ;;  %v1676_v38 = vld [vmem:[%s2942_s3 + $0x298] sm:$0xff] }
 0x23c   :  { %v2079_v17 = vpack.c.bf16 %v717_v4, %v716_v14  ;;  %v1690_v61 = vld [vmem:[%s2942_s3 + $0x308] sm:$0xff] }
 0x23d   :  { %2072 = vmatpush3.bf16.msra.mxu1 %v2071_v5  ;;  %v2175_v63 = vpack.c.bf16 %v1690_v61, %v1689_v60  ;;  %v1691_v5 = vld [vmem:[%s2942_s3 + $0x310] sm:$0xff] }
 0x23e   :  { %2103 = vmatpush1.bf16.msra.mxu0 %v2444_v0  ;;  %2074 = vmatprep.subr.bf16.mxu1 %v2073_v6  ;;  %v735_v0 = vld [vmem:[%s2942_s3 + $0xf8] sm:$0xff] }
 0x23f   :  { %2105 = vmatprep.subr.bf16.mxu0 %v2457_v33  ;;  %v2081_v19 = vpack.c.bf16 %v735_v0, %v734_v15  ;;  %v719_v33 = vld [vmem:[%s2942_s3 + $0x78] sm:$0xff] }
 0x240   :  { %v2083_v22 = vpack.c.bf16 %v719_v33, %v718_v20  ;;  %v1692_v6 = vld [vmem:[%s2942_s3 + $0x318] sm:$0xff] }
 0x241   :  { %2076 = vmatpush3.bf16.msra.mxu1 %v2075_v11  ;;  %v2179_v41 = vpack.c.bf16 %v1692_v6, %v1691_v5  ;;  %v2181_v11 = vpack.c.bf16 %v1676_v38, %v1675_v10 }
 0x242   :  { %2107 = vmatpush1.bf16.msra.mxu0 %v2454_v29  ;;  %2078 = vmatprep.subr.bf16.mxu1 %v2077_v12  ;;  %v736_v29 = vld [vmem:[%s2942_s3 + $0x100] sm:$0xff] }
 0x243   :  { %2109 = vmatprep.subr.bf16.mxu0 %v2466_v62  ;;  %v2086_v28 = vpack.c.bf16 %v737_v23, %v736_v29  ;;  %v1663_v62 = vld [vmem:[%s2942_s3 + $0x230] sm:$0xff] }
 0x245   :  { %2080 = vmatpush3.bf16.msra.mxu1 %v2079_v17 }
 0x246   :  { %2111 = vmatpush1.bf16.msra.mxu0 %v2464_v59  ;;  %2082 = vmatprep.subr.bf16.mxu1 %v2081_v19 }
 0x247   :  { %2113 = vmatprep.subr.bf16.mxu0 %v2476_v31  ;;  %v1681_v31 = vld [vmem:[%s2942_s3 + $0x2c0] sm:$0xff] }
 0x249   :  { %2084 = vmatpush3.bf16.msra.mxu1 %v2083_v22 }
 0x24a   :  { %2115 = vmatpush1.bf16.msra.mxu0 %v2474_v25  ;;  %2085 = vmatprep.subr.bf16.mxu1 %v2247_v26 }
 0x24b   :  { %2117 = vmatprep.subr.bf16.mxu0 %v2486_v2 }
 0x24c   :  { %1139 = vmatmul.mubr.f32.vlgmr.msra.gmra.mrb[42].mxu1 %v2663_v8 }
 0x24d   :  { %2087 = vmatpush3.bf16.msra.mxu1 %v2086_v28  ;;  %1882 = vmatprep.mubr.msk.f32.mxu1 %vm2245_vm0, %v2244_v1 }
 0x24e   :  { %2119 = vmatpush1.bf16.msra.mxu0 %v2483_v57  ;;  %2124 = vmatprep.subr.bf16.mxu1 %v2247_v26  ;;  %v1665_v57 = vld [vmem:[%s2942_s3 + $0x240] sm:$0xff] }
 0x24f   :  { %2121 = vmatprep.subr.bf16.mxu0 %v2500_v35  ;;  %v1684_v35 = vld [vmem:[%s2942_s3 + $0x2d8] sm:$0xff] }
 0x250   :  { %1883 = vmatmul.mubr.msk.f32.vlgmr.msra.gmra.mrb[44].mxu1 %vm560_vm2, %v2661_v56 }
 0x251   :  { %2126 = vmatpush1.bf16.msra.mxu1 %v2411_v47  ;;  %1660 = vmatprep.mubr.msk.f32.mxu1 %vm560_vm2, %v2709_v46  ;;  %v1677_v47 = vld [vmem:[%s2942_s3 + $0x2a0] sm:$0xff] }
 0x252   :  { %2123 = vmatpush1.bf16.msra.mxu0 %v2498_v34  ;;  %2127 = vmatprep.subr.bf16.mxu1 %v2247_v26  ;;  %v1683_v34 = vld [vmem:[%s2942_s3 + $0x2d0] sm:$0xff]  ;;  %v1693_v46 = vld [vmem:[%s2942_s3 + $0x320] sm:$0xff] }
 0x253   :  { %v2163_v8 = vpack.c.bf16 %v1684_v35, %v1683_v34  ;;  %v2184_v49 = vpack.c.bf16 %v1694_v48, %v1693_v46 }
 0x255   :  { %2129 = vmatpush1.bf16.msra.mxu1 %v2421_v7  ;;  %1293 = vmatmul.mubr.f32.vlgmr.msra.gmra.mrb[42].mxu0 %v2693_v36  ;;  %v1678_v7 = vld [vmem:[%s2942_s3 + $0x2a8] sm:$0xff] }
 0x256   :  { %2130 = vmatprep.subr.bf16.mxu1 %v2247_v26 }
 0x259   :  { %2132 = vmatpush1.bf16.msra.mxu1 %v2431_v32  ;;  %v2151_v32 = vpack.c.bf16 %v1678_v7, %v1677_v47 }
 0x25a   :  { %2133 = vmatprep.subr.bf16.mxu1 %v2247_v26 }
 0x25b   :  { %2152 = vmatprep.subr.bf16.mxu0 %v2151_v32 }
 0x25d   :  { %2135 = vmatpush1.bf16.msra.mxu1 %v2441_v58  ;;  %v1661_v58 = vld [vmem:[%s2942_s3 + $0x220] sm:$0xff] }
 0x25e   :  { %2136 = vmatprep.subr.bf16.mxu1 %v2247_v26 }
 0x261   :  { %2138 = vmatpush1.bf16.msra.mxu1 %v2451_v21 }
 0x262   :  { %2139 = vmatprep.subr.bf16.mxu1 %v2247_v26 }
 0x265   :  { %2141 = vmatpush1.bf16.msra.mxu1 %v2461_v50  ;;  %v1680_v50 = vld [vmem:[%s2942_s3 + $0x2b8] sm:$0xff] }
 0x266   :  { %2142 = vmatprep.subr.bf16.mxu1 %v2247_v26 }
 0x269   :  { %2144 = vmatpush1.bf16.msra.mxu1 %v2471_v18  ;;  %v1664_v18 = vld [vmem:[%s2942_s3 + $0x238] sm:$0xff] }
 0x26a   :  { %2145 = vmatprep.subr.bf16.mxu1 %v2247_v26  ;;  %v2157_v25 = vpack.c.bf16 %v1664_v18, %v1663_v62  ;;  %v1696_v18 = vld [vmem:[%s2943_s4] ss:$0 sm:$0xff] }
 0x26d   :  { %2147 = vmatpush1.bf16.msra.mxu1 %v2481_v51  ;;  %v1682_v51 = vld [vmem:[%s2942_s3 + $0x2c8] sm:$0xff] }
 0x26e   :  { %2148 = vmatprep.subr.bf16.mxu1 %v2247_v26  ;;  %v2159_v2 = vpack.c.bf16 %v1682_v51, %v1681_v31 }
 0x271   :  { %2150 = vmatpush1.bf16.msra.mxu1 %v2491_v24  ;;  %v1666_v24 = vld [vmem:[%s2942_s3 + $0x248] sm:$0xff] }
 0x272   :  { %2183 = vmatprep.subr.bf16.mxu1 %v2247_v26  ;;  %v1662_v26 = vld [vmem:[%s2942_s3 + $0x228] sm:$0xff]  ;;  %v2161_v56 = vpack.c.bf16 %v1666_v24, %v1665_v57 }
 0x273   :  { %v2153_v21 = vpack.c.bf16 %v1662_v26, %v1661_v58 }
 0x274   :  { %1364 = vmatmul.mubr.f32.vlgmr.msra.gmra.mrb[46].mxu1 %v2693_v36  ;;  %v1668_v36 = vld [vmem:[%s2942_s3 + $0x258] sm:$0xff] }
 0x275   :  { %1889 = vmatprep.mubr.msk.f32.mxu1 %vm2245_vm0, %v2244_v1  ;;  %2154 = vmatpush3.bf16.msra.mxu0 %v2153_v21  ;;  %v1679_v1 = vld [vmem:[%s2942_s3 + $0x2b0] sm:$0xff]  ;;  %v2165_v39 = vpack.c.bf16 %v1668_v36, %v1667_v30 }
 0x276   :  { %v2155_v59 = vpack.c.bf16 %v1680_v50, %v1679_v1  ;;  %2185 = vmatpush3.bf16.msra.mxu1 %v2184_v49 }
 0x278   :  { %2156 = vmatprep.subr.bf16.mxu0 %v2155_v59 }
 0x279   :  { %2158 = vmatpush3.bf16.msra.mxu0 %v2157_v25 }
 0x27a   :  { %2160 = vmatprep.subr.bf16.mxu0 %v2159_v2 }
 0x27d   :  { %2162 = vmatpush3.bf16.msra.mxu0 %v2161_v56 }
 0x27e   :  { %2164 = vmatprep.subr.bf16.mxu0 %v2163_v8 }
 0x281   :  { %2166 = vmatpush3.bf16.msra.mxu0 %v2165_v39 }
 0x282   :  { %2168 = vmatprep.subr.bf16.mxu0 %v2167_v40 }
 0x285   :  { %2170 = vmatpush3.bf16.msra.mxu0 %v2169_v52 }
 0x286   :  { %2172 = vmatprep.subr.bf16.mxu0 %v2171_v54 }
 0x289   :  { %2174 = vmatpush3.bf16.msra.mxu0 %v2173_v16 }
 0x28a   :  { %2176 = vmatprep.subr.bf16.mxu0 %v2175_v63 }
 0x28d   :  { %2178 = vmatpush3.bf16.msra.mxu0 %v2177_v9 }
 0x28e   :  { %2180 = vmatprep.subr.bf16.mxu0 %v2179_v41 }
 0x291   :  { %2182 = vmatpush3.bf16.msra.mxu0 %v2181_v11 }
 0x2ff   :  { %v1067_v12 = vpop.f32.mrb[40].mxu1 }
 0x300   :  { %v1877_v14 = vpop.f32.mrb[41].mxu1 }
 0x304   :  { %v1743_v4 = vpop.f32.mrb[40].mxu0 }
 0x305   :  { %v1744_v15 = vpop.f32.mrb[41].mxu0 }
 0x306   :  { %v1745_v0 = vadd.f32 %v1744_v15, %v1743_v4 }
 0x308   :  { %v1068_v17 = vadd.f32 %v1745_v0, %v1067_v12 }
 0x31f   :  { %v1781_v19 = vpop.f32.mrb[42].mxu1 }
 0x320   :  { %v1782_v20 = vpop.f32.mrb[43].mxu1 }
 0x321   :  { %v1783_v33 = vadd.f32 %v1782_v20, %v1781_v19 }
 0x323   :  { %v1141_v22 = vadd.f32 %v1783_v33, %v1068_v17  ;;  %v1210_v29 = vpop.f32.mrb[44].mxu1 }
 0x324   :  { %v1884_v23 = vpop.f32.mrb[45].mxu1 }
 0x325   :  { %v1211_v28 = vadd.f32 %v1210_v29, %v1141_v22 }
 0x328   :  { %v1294_v47 = vpop.f32.mrb[42].mxu0 }
 0x329   :  { %v1296_v7 = vpop.f32.mrb[43].mxu0 }
 0x32a   :  { %1471 = vmatprep.mubr.f32.mxu0 %v1296_v7 }
 0x32b   :  { %1472 = vmatmul.mubr.f32.vlgmr.msra.gmra.mrb[44].mxu0 %v1294_v47 }
 0x347   :  { %v1365_v32 = vpop.f32.mrb[46].mxu1 }
 0x348   :  { %1890 = vmatmul.mubr.msk.f32.vlgmr.msra.gmra.mrb[48].mxu1 %vm560_vm2, %v1365_v32  ;;  %v1367_v58 = vpop.f32.mrb[47].mxu1 }
 0x3fe   :  { %v1819_v26 = vpop.f32.mrb[44].mxu0 }
 0x3ff   :  { %v1820_v21 = vpop.f32.mrb[45].mxu0 }
 0x400   :  { %v1821_v1 = vadd.f32 %v1820_v21, %v1819_v26 }
 0x41b   :  { %v1543_v50 = vpop.f32.mrb[48].mxu1 }
 0x41c   :  { %v1544_v59 = vadd.f32 %v1821_v1, %v1543_v50  ;;  %v1891_v62 = vpop.f32.mrb[49].mxu1 }
 0x41e   :  { %v1547_v25 = vadd.f32 %v1544_v59, %v1211_v28 }
 0x420   :  { %v1555_v31 = vadd.f32 %v1696_v18, %v1547_v25 }
 0x422   :  { %1557 = vst.msk [vmem:[#allocation2] sm:$0x3] %vm1556_vm3, %v1555_v31 }
 0x423   :  { %2231 = shalt.err (!%p2228_p4)
}
 0x424   :  { %s2232_s10 = scalar_lea.hbm %s2944_s5, 32 }
 0x425   :  { %p2233_p5 = scmp.ne.s32.totalorder %s2944_s5, %s2232_s10  ;;  %p2236_p6 = scmp.lt.u32.totalorder %s2232_s10, %s2944_s5 }
 0x427   :  { %p2238_p7 = pnand %p2236_p6, %p2233_p5 }
 0x429   :  { %2241 = shalt.err (!%p2238_p7)
}
 0x42a   :  { %1567 = dma.vmem_to_hbm [thread:$0]  %s1565_s2, 32, %s2944_s5, [#allocation3]  }
 0x42b   :  { %2242 = dma.done.wait [#allocation3], 32  }
 0x42c   :  { %2243 = vsyncadd [#allocation3], 4294967264 }
 0x42d   :  { %1571 = vsyncpa [#allocation3], 1 }

</bundles_post_ra>
